<compile_context>
chip_gen: v7x
topology: tpu7x:2x2x1
jax: 0.10.0
libtpu: 0.0.40
codegen_flags: <defaults>
</compile_context>

<pallas_src>
import functools

import jax
import jax.numpy as jnp
from jax import lax
from jax.experimental import pallas as pl
from jax.experimental.pallas import tpu as pltpu


def _dice_stats_kernel(preds_ref, tgt_ref, out_ref, *, hw, tile_hw):
    """Accumulate per-class [intersection, pred_sum, target_sum] into out_ref (C, 3)."""
    j = pl.program_id(1)

    @pl.when(j == 0)
    def _init():
        out_ref[...] = jnp.zeros_like(out_ref)

    logits = preds_ref[...].astype(jnp.float32)            # (C, T)  pixels on lanes
    tgt = tgt_ref[...]                                     # (1, T)  int32 class ids

    # Valid-pixel mask for the (possibly ragged) last tile.
    lane = lax.broadcasted_iota(jnp.int32, (1, tile_hw), 1)
    valid = hw - j * tile_hw                               # static python ints -> scalar
    mask_b = lane < valid                                  # (1, T) bool
    maskf = mask_b.astype(jnp.float32)                     # (1, T)

    # Numerically-safe softmax over the class (sublane) axis.
    logits = jnp.where(mask_b, logits, 0.0)                # keep OOB lanes finite
    m = jnp.max(logits, axis=0, keepdims=True)             # (1, T)
    e = jnp.exp(logits - m)                                # (C, T)
    denom = jnp.sum(e, axis=0, keepdims=True)              # (1, T)
    probs = e * pl.reciprocal(denom)                       # exact 1/x, EUP slot

    cls_ids = lax.broadcasted_iota(jnp.int32, logits.shape, 0)   # (C, T)
    onehot = (tgt == cls_ids).astype(jnp.float32)                # (C, T)

    probs_m = probs * maskf
    onehot_m = onehot * maskf

    inter = jnp.sum(probs_m * onehot_m, axis=1, keepdims=True)   # (C, 1)
    psum = jnp.sum(probs_m, axis=1, keepdims=True)               # (C, 1)
    tsum = jnp.sum(onehot_m, axis=1, keepdims=True)              # (C, 1)

    # Single coalesced read-modify-write of the resident accumulator.
    out_ref[...] += jnp.concatenate([inter, psum, tsum], axis=1)  # (C, 3)


def dice_loss_pallas(preds, targets, num_classes, smooth=1.0,
                     ignore_index=None, max_tile_hw=8192):
    """preds: [B, C, H, W] logits (any float dtype); targets: [B, H, W] class ids."""
    B, C, H, W = preds.shape
    assert C == num_classes
    assert max_tile_hw % 128 == 0
    HW = H * W

    # NCHW -> [B, C, HW] is a free reshape (no transpose pass through HBM).
    preds3d = preds.reshape(B, C, HW)
    tgt3d = targets.reshape(B, 1, HW).astype(jnp.int32)

    if HW <= max_tile_hw:
        tile_hw = HW                 # full extent: no (8,128) block constraint
    else:
        tile_hw = max_tile_hw        # 128-aligned; ragged last tile is masked
    num_tiles = pl.cdiv(HW, tile_hw)

    kernel = functools.partial(_dice_stats_kernel, hw=HW, tile_hw=tile_hw)

    stats = pl.pallas_call(
        kernel,
        out_shape=jax.ShapeDtypeStruct((B, C, 3), jnp.float32),
        grid_spec=pltpu.PrefetchScalarGridSpec(
            num_scalar_prefetch=0,
            grid=(B, num_tiles),
            in_specs=[
                pl.BlockSpec((pl.Squeezed(), C, tile_hw), lambda b, j: (b, 0, j)),
                pl.BlockSpec((pl.Squeezed(), 1, tile_hw), lambda b, j: (b, 0, j)),
            ],
            out_specs=pl.BlockSpec((pl.Squeezed(), C, 3), lambda b, j: (b, 0, 0)),
        ),
        compiler_params=pltpu.CompilerParams(
            dimension_semantics=("parallel", "arbitrary"),
        ),
    )(preds3d, tgt3d)

    # Tiny finalization in plain JAX (keeps ignore_index mask / smooth out of the
    # kernel so no array constants are captured).
    total = jnp.sum(stats, axis=0)                         # (C, 3)
    inter, psum, tsum = total[:, 0], total[:, 1], total[:, 2]
    dice = (2.0 * inter + smooth) / (psum + tsum + smooth)
    per_class = 1.0 - dice
    cmask = [0.0 if (ignore_index is not None and c == ignore_index) else 1.0
             for c in range(num_classes)]
    cmask = jnp.asarray(cmask, dtype=jnp.float32)
    return jnp.sum(per_class * cmask) / num_classes


def dice_loss_ref(preds, targets, num_classes, smooth=1.0, ignore_index=None):
    """Pure-JAX reference mirroring the PyTorch forward."""
    probs = jax.nn.softmax(preds.astype(jnp.float32), axis=1)
    loss = 0.0
    for cls in range(num_classes):
        if ignore_index is not None and cls == ignore_index:
            continue
        p = probs[:, cls].reshape(-1)
        t = (targets == cls).astype(jnp.float32).reshape(-1)
        inter = jnp.sum(p * t)
        union = jnp.sum(p) + jnp.sum(t)
        dice = (2.0 * inter + smooth) / (union + smooth)
        loss = loss + (1.0 - dice)
    return loss / num_classes


if __name__ == "__main__":
    key = jax.random.PRNGKey(0)
    k1, k2, k3, k4 = jax.random.split(key, 4)

    # Case 1: basic, single tile per batch element.
    B, C, H, W = 2, 4, 16, 16
    preds = jax.random.normal(k1, (B, C, H, W), dtype=jnp.float32)
    targets = jax.random.randint(k2, (B, H, W), 0, C, dtype=jnp.int32)

    out = dice_loss_pallas(preds, targets, num_classes=C, smooth=1.0,
                           ignore_index=None)
    out = jax.block_until_ready(out)
    ref = dice_loss_ref(preds, targets, num_classes=C, smooth=1.0,
                        ignore_index=None)
    assert jnp.allclose(out, ref, atol=1e-5, rtol=1e-5), (out, ref)

    # Case 2: ignore_index masking (handled in the wrapper epilogue).
    out_ig = dice_loss_pallas(preds, targets, num_classes=C, smooth=1.0,
                              ignore_index=2)
    out_ig = jax.block_until_ready(out_ig)
    ref_ig = dice_loss_ref(preds, targets, num_classes=C, smooth=1.0,
                           ignore_index=2)
    assert jnp.allclose(out_ig, ref_ig, atol=1e-5, rtol=1e-5), (out_ig, ref_ig)

    # Case 3: multi-tile with a ragged last tile (HW=300, tile=128 -> 128/128/44).
    B2, H2, W2 = 1, 15, 20
    preds2 = jax.random.normal(k3, (B2, C, H2, W2), dtype=jnp.float32)
    targets2 = jax.random.randint(k4, (B2, H2, W2), 0, C, dtype=jnp.int32)
    out2 = dice_loss_pallas(preds2, targets2, num_classes=C, smooth=1.0,
                            ignore_index=None, max_tile_hw=128)
    out2 = jax.block_until_ready(out2)
    ref2 = dice_loss_ref(preds2, targets2, num_classes=C, smooth=1.0,
                         ignore_index=None)
    assert jnp.allclose(out2, ref2, atol=1e-5, rtol=1e-5), (out2, ref2)

    print("KERNEL_OK")
</pallas_src>

<mosaic_0001>
module attributes {stable_mosaic.version = 11 : i64} {
  func.func @_dice_stats_kernel(%arg0: i32, %arg1: i32, %arg2: memref<1x4x256xf32, #tpu.memory_space<vmem>>, %arg3: memref<1x1x256xi32, #tpu.memory_space<vmem>>, %arg4: memref<1x4x3xf32, #tpu.memory_space<vmem>>) attributes {dimension_semantics = [#tpu.dimension_semantics<parallel>, #tpu.dimension_semantics<arbitrary>], iteration_bounds = array<i64: 2, 1>, scalar_prefetch = 0 : i64, scratch_operands = 0 : i64, tpu.core_type = #tpu.core_type<tc>, window_params = [{transform_indices = @transform_0, window_bounds = array<i64: 1, 4, 256>}, {transform_indices = @transform_1, window_bounds = array<i64: 1, 1, 256>}, {transform_indices = @transform_2, window_bounds = array<i64: 1, 4, 3>}]} {
    %c0_i32 = arith.constant 0 : i32
    %0 = arith.cmpi eq, %arg1, %c0_i32 : i32
    %1 = arith.extui %0 : i1 to i32
    %c0_i32_0 = arith.constant 0 : i32
    %2 = arith.cmpi ne, %1, %c0_i32_0 : i32
    scf.if %2 {
      %cst_18 = arith.constant 0.000000e+00 : f32
      %51 = vector.broadcast %cst_18 : f32 to vector<4x3xf32>
      %c0_19 = arith.constant 0 : index
      %c0_20 = arith.constant 0 : index
      %c0_21 = arith.constant 0 : index
      %52 = vector.load %arg4[%c0_19, %c0_20, %c0_21] : memref<1x4x3xf32, #tpu.memory_space<vmem>>, vector<1x4x3xf32>
      %53 = vector.shape_cast %52 : vector<1x4x3xf32> to vector<4x3xf32>
      %54 = vector.shape_cast %51 : vector<4x3xf32> to vector<1x4x3xf32>
      tpu.vector_store %arg4[%c0_19, %c0_20, %c0_21], %54 {strides = array<i32>} : memref<1x4x3xf32, #tpu.memory_space<vmem>>, vector<1x4x3xf32>,
    } else {
    }
    %c0 = arith.constant 0 : index
    %c0_1 = arith.constant 0 : index
    %c0_2 = arith.constant 0 : index
    %3 = vector.load %arg2[%c0, %c0_1, %c0_2] : memref<1x4x256xf32, #tpu.memory_space<vmem>>, vector<1x4x256xf32>
    %4 = vector.shape_cast %3 : vector<1x4x256xf32> to vector<4x256xf32>
    %c0_3 = arith.constant 0 : index
    %c0_4 = arith.constant 0 : index
    %c0_5 = arith.constant 0 : index
    %5 = vector.load %arg3[%c0_3, %c0_4, %c0_5] : memref<1x1x256xi32, #tpu.memory_space<vmem>>, vector<1x1x256xi32>
    %6 = vector.shape_cast %5 : vector<1x1x256xi32> to vector<1x256xi32>
    %7 = tpu.iota {dimensions = array<i32: 1>} : vector<1x256xi32>
    %c256_i32 = arith.constant 256 : i32
    %8 = arith.muli %arg1, %c256_i32 : i32
    %c256_i32_6 = arith.constant 256 : i32
    %9 = arith.subi %c256_i32_6, %8 : i32
    %10 = vector.broadcast %9 : i32 to vector<1x256xi32>
    %11 = arith.cmpi slt, %7, %10 : vector<1x256xi32>
    %12 = arith.extui %11 : vector<1x256xi1> to vector<1x256xi32>
    %13 = arith.sitofp %12 : vector<1x256xi32> to vector<1x256xf32>
    %cst = arith.constant 0.000000e+00 : f32
    %14 = vector.shape_cast %11 : vector<1x256xi1> to vector<1x256xi1>
    %15 = vector.broadcast %14 : vector<1x256xi1> to vector<4x256xi1>
    %16 = vector.broadcast %cst : f32 to vector<4x256xf32>
    %17 = arith.select %15, %4, %16 : vector<4x256xi1>, vector<4x256xf32>
    %cst_7 = arith.constant dense<0xFF800000> : vector<256xf32>
    %18 = vector.multi_reduction <maximumf>, %17, %cst_7 [0] : vector<4x256xf32> to vector<256xf32>
    %19 = vector.shape_cast %18 : vector<256xf32> to vector<1x256xf32>
    %20 = vector.broadcast %19 : vector<1x256xf32> to vector<4x256xf32>
    %21 = arith.subf %17, %20 : vector<4x256xf32>
    %22 = math.exp %21 : vector<4x256xf32>
    %cst_8 = arith.constant dense<0.000000e+00> : vector<256xf32>
    %23 = vector.multi_reduction <add>, %22, %cst_8 [0] : vector<4x256xf32> to vector<256xf32>
    %24 = vector.shape_cast %23 : vector<256xf32> to vector<1x256xf32>
    %25 = tpu.reciprocal %24 : vector<1x256xf32> -> vector<1x256xf32>
    %26 = vector.broadcast %25 : vector<1x256xf32> to vector<4x256xf32>
    %27 = arith.mulf %22, %26 : vector<4x256xf32>
    %28 = tpu.iota {dimensions = array<i32: 0>} : vector<4x256xi32>
    %29 = vector.broadcast %6 : vector<1x256xi32> to vector<4x256xi32>
    %30 = arith.cmpi eq, %29, %28 : vector<4x256xi32>
    %31 = arith.extui %30 : vector<4x256xi1> to vector<4x256xi32>
    %32 = arith.sitofp %31 : vector<4x256xi32> to vector<4x256xf32>
    %33 = vector.broadcast %13 : vector<1x256xf32> to vector<4x256xf32>
    %34 = arith.mulf %27, %33 : vector<4x256xf32>
    %35 = vector.broadcast %13 : vector<1x256xf32> to vector<4x256xf32>
    %36 = arith.mulf %32, %35 : vector<4x256xf32>
    %37 = arith.mulf %34, %36 : vector<4x256xf32>
    %cst_9 = arith.constant dense<0.000000e+00> : vector<4xf32>
    %38 = vector.multi_reduction <add>, %37, %cst_9 [1] : vector<4x256xf32> to vector<4xf32>
    %39 = vector.shape_cast %38 : vector<4xf32> to vector<4x1xf32>
    %cst_10 = arith.constant dense<0.000000e+00> : vector<4xf32>
    %40 = vector.multi_reduction <add>, %34, %cst_10 [1] : vector<4x256xf32> to vector<4xf32>
    %41 = vector.shape_cast %40 : vector<4xf32> to vector<4x1xf32>
    %cst_11 = arith.constant dense<0.000000e+00> : vector<4xf32>
    %42 = vector.multi_reduction <add>, %36, %cst_11 [1] : vector<4x256xf32> to vector<4xf32>
    %43 = vector.shape_cast %42 : vector<4xf32> to vector<4x1xf32>
    %c0_12 = arith.constant 0 : index
    %c0_13 = arith.constant 0 : index
    %c0_14 = arith.constant 0 : index
    %44 = vector.load %arg4[%c0_12, %c0_13, %c0_14] : memref<1x4x3xf32, #tpu.memory_space<vmem>>, vector<1x4x3xf32>
    %45 = vector.shape_cast %44 : vector<1x4x3xf32> to vector<4x3xf32>
    %46 = tpu.concatenate %39, %41, %43 in 1 : vector<4x1xf32>, vector<4x1xf32>, vector<4x1xf32> -> vector<4x3xf32>
    %47 = arith.addf %45, %46 : vector<4x3xf32>
    %c0_15 = arith.constant 0 : index
    %c0_16 = arith.constant 0 : index
    %c0_17 = arith.constant 0 : index
    %48 = vector.load %arg4[%c0_15, %c0_16, %c0_17] : memref<1x4x3xf32, #tpu.memory_space<vmem>>, vector<1x4x3xf32>
    %49 = vector.shape_cast %48 : vector<1x4x3xf32> to vector<4x3xf32>
    %50 = vector.shape_cast %47 : vector<4x3xf32> to vector<1x4x3xf32>
    tpu.vector_store %arg4[%c0_15, %c0_16, %c0_17], %50 {strides = array<i32>} : memref<1x4x3xf32, #tpu.memory_space<vmem>>, vector<1x4x3xf32>,
    return
  }
  func.func @transform_0(%arg0: i32, %arg1: i32) -> (i32, i32, i32) {
    %c0_i32 = arith.constant 0 : i32
    %c0_i32_0 = arith.constant 0 : i32
    return %arg0, %c0_i32, %arg1 : i32, i32, i32
  }
  func.func @transform_1(%arg0: i32, %arg1: i32) -> (i32, i32, i32) {
    %c0_i32 = arith.constant 0 : i32
    %c0_i32_0 = arith.constant 0 : i32
    return %arg0, %c0_i32, %arg1 : i32, i32, i32
  }
  func.func @transform_2(%arg0: i32, %arg1: i32) -> (i32, i32, i32) {
    %c0_i32 = arith.constant 0 : i32
    %c0_i32_0 = arith.constant 0 : i32
    %c0_i32_1 = arith.constant 0 : i32
    return %arg0, %c0_i32, %c0_i32_0 : i32, i32, i32
  }
}

</mosaic_0001>

<bundles_post_ra>
// kernel: tpu_custom_call.1
= control target key start
LH: loop header
LB: loop body
LE: loop exit
PB: predicated region body
PF: predicated region fallthrough
CT: control target
= control target key end

     0   :  { %7 = vsyncpa [#allocation3], 0  ;;  %s840_s0 = inlined_call_operand.hbm [shape: f32[2,4,256], index: 0, kind: input, shape index: {}]   ;;  %s841_s1 = inlined_call_operand.hbm [shape: s32[2,1,256], index: 1, kind: input, shape index: {}]   ;;  %s842_s2 = inlined_call_operand.vmem [shape: f32[2,4,3], index: 2, kind: output, shape index: {}]  }
   0x1   :  { %9 = vsyncpa [#allocation3 + $0x1], 0 }
   0x2   :  { %10 = vsyncpa [#allocation5], 0 }
   0x3   :  { %12 = vsyncpa [#allocation5 + $0x1], 0  ;;  %s657_s9 = smov 0   ;;  %s659_s10 = smov 0  }
   0x4   :  { %s661_s11 = smov 0   ;;  %s663_s12 = smov 0  }
   0x5   :  { %s665_s13 = smov 0   ;;  %s667_s14 = smov 0  }
   0x6 LB: > { %s433_s15 = sadd.s32 4294967295, %s637_s14   ;;  %s30_s16 = sadd.s32 1, %s633_s13  ;;  %s637_s14 = sphi %s667_s14, %s18_s14   ;;  %s633_s13 = sphi %s665_s13, %s856_s13   ;;  %s629_s12 = sphi %s663_s12, %s855_s12   ;;  %s625_s11 = sphi %s661_s11, %s854_s11   ;;  %s621_s10 = sphi %s659_s10, %s853_s10   ;;  %s617_s9 = sphi %s657_s9, %s852_s9  }
   0x7   : > { %p32_p0 = scmp.ge.s32.totalorder %s30_s16, 2  ;;  %s39_s17 = sadd.s32 1, %s625_s11 }
   0x8   : > { %p46_p1 = scmp.ne.s32.totalorder %s625_s11, %s621_s10  ;;  %p47_p2 = scmp.eq.s32.totalorder %s637_s14, 0 }
   0x9   : > { %s858_s16 = smov (%p32_p0, %s30_s16), 0  ;;  %p52_p4 = scmp.ne.s32.totalorder %s621_s10, %s617_s9 }
   0xa   : > { %p693_p3 = por %p47_p2, %p46_p1  ;;  %s34_s19 = ssub.s32 %s633_s13, %s858_s16 }
   0xb   : > { %p53_p5 = scmp.eq.s32.totalorder %s433_s15, 0  ;;  %p37_p6 = scmp.eq.s32.totalorder %s34_s19, 0 }
   0xc   : > { %p464_p8 = scmp.lt.s32.totalorder %s637_s14, 2  ;;  %s709_s22 = sand.u32 1, %s625_s11  }
   0xd   : > { %p700_p7 = por %p53_p5, %p52_p4  ;;  %s451_s23 = sshll.u32 %s633_s13, 7 }
   0xe   : > { %s706_s21 = scalar_select %p37_p6, %s625_s11, %s39_s17  }
   0xf   : > { %s845_s20 = scalar_select %p700_p7, 1, 0 }
  0x10   : > { %s437_s24 = sshll.u32 %s709_s22, 3  ;;  %s716_s27 = scalar_lea.hbm %s840_s0, %s451_s23 }
  0x11   : > { %s134_s28 = scalar_lea.vmem [#allocation2], %s437_s24  ;;  %p720_p9 = pnand %p464_p8, %p693_p3 }
  0x12   : > { %s144_s29 = sshll.u32 %s134_s28, 4  ;;  %s131_s3 = scalar_lea.sflag [#allocation3], %s709_s22  ;;  %s724_s29 = int_to_ptr.vmem [resolvable:$true] %s144_s29 }
  0x13   : > { %s523_s4 = scalar_lea.hbm %s716_s27, 128  ;;  %p525_p13 = pneg %p720_p9 }
  0x14   : > { %p524_p12 = scmp.ne.s32.totalorder %s716_s27, %s523_s4  ;;  %s528_s7 = scalar_lea.hbm %s840_s0, 256 }
  0x15   : > { %p529_p2 = scmp.lt.u32.totalorder %s716_s27, %s840_s0  ;;  %p530_p3 = scmp.lt.u32.totalorder %s528_s7, %s523_s4 }
  0x16   : > { %p526_p0 = pnand %p525_p13, %p524_p12  ;;  %p532_p5 = scmp.lt.u32.totalorder %s523_s4, %s716_s27 }
  0x17   : > { %p531_p4 = por %p530_p3, %p529_p2 }
  0x18   : > { %p527_p1 = pneg %p526_p0 }
  0x19   : > { %p533_p6 = por %p532_p5, %p531_p4 }
  0x1b   : > { %p534_p8 = pnand %p533_p6, %p527_p1 }
  0x1d   : > { %537 = shalt.err (!%p534_p8)
}
  0x1e   : > { %s538_s15 = scalar_lea.vmem %s724_s29, 128  ;;  %s639_s17 = smov [#allocation2]  }
  0x1f   : > { %p539_p12 = scmp.ne.s32.totalorder %s724_s29, %s538_s15  ;;  %s543_s18 = sshll.u32 %s639_s17, 4  ;;  %s544_s18 = int_to_ptr.vmem [resolvable:$false] %s543_s18 }
  0x20   : > { %s545_s19 = scalar_lea.vmem %s544_s18, 256  ;;  %p546_p11 = scmp.lt.s32.totalorder %s724_s29, %s544_s18 }
  0x21   : > { %p541_p0 = pnand %p539_p12, %p525_p13  ;;  %p547_p2 = scmp.lt.s32.totalorder %s545_s19, %s538_s15 }
  0x23   : > { %p542_p10 = pneg %p541_p0  ;;  %p548_p3 = por %p547_p2, %p546_p11 }
  0x25   : > { %p549_p4 = pnand %p548_p3, %p542_p10 }
  0x27   : > { %552 = shalt.err (!%p549_p4)
}
  0x28   : > { %460 = dma.hbm_to_vmem [thread:$0]  (!%p720_p9), %s716_s27, 128, %s724_s29, %s131_s3  }
  0x29   : > { %p847_p1 = scmp.lt.s32.totalorder %s637_s14, 3  ;;  %p848_p5 = scmp.ge.s32.totalorder %s637_s14, 1 }
  0x2a   : > { %s440_s24 = sshll.u32 %s709_s22, 1  ;;  %s452_s25 = sshll.u32 %s633_s13, 5 }
  0x2b   : > { %p758_p6 = pnand %p848_p5, %p847_p1  ;;  %s767_s4 = scalar_lea.hbm %s841_s1, %s452_s25 }
  0x2c   : > { %s155_s5 = scalar_lea.vmem [#allocation4], %s440_s24  ;;  %s152_s27 = scalar_lea.sflag [#allocation5], %s709_s22 }
  0x2d   : > { %s849_s23 = scalar_select %p758_p6, 1, 0 }
  0x2e   : > { %s165_s6 = sshll.u32 %s155_s5, 4  ;;  %s553_s29 = scalar_lea.hbm %s767_s4, 32  ;;  %s166_s6 = int_to_ptr.vmem [resolvable:$true] %s165_s6 }
  0x2f   : > { %p554_p10 = scmp.ne.s32.totalorder %s767_s4, %s553_s29  ;;  %s558_s8 = scalar_lea.hbm %s841_s1, 64 }
  0x30   : > { %p559_p12 = scmp.lt.u32.totalorder %s767_s4, %s841_s1  ;;  %p560_p0 = scmp.lt.u32.totalorder %s558_s8, %s553_s29 }
  0x31   : > { %p556_p11 = pnand %p554_p10, %p525_p13  ;;  %p562_p3 = scmp.lt.u32.totalorder %s553_s29, %s767_s4 }
  0x32   : > { %p561_p2 = por %p560_p0, %p559_p12 }
  0x33   : > { %p557_p8 = pneg %p556_p11 }
  0x34   : > { %p563_p4 = por %p562_p3, %p561_p2 }
  0x36   : > { %p564_p1 = pnand %p563_p4, %p557_p8 }
  0x38   : > { %567 = shalt.err (!%p564_p1)
}
  0x39   : > { %s568_s22 = scalar_lea.vmem %s166_s6, 32  ;;  %s640_s17 = smov [#allocation4]  }
  0x3a   : > { %p569_p5 = scmp.ne.s32.totalorder %s166_s6, %s568_s22  ;;  %s573_s18 = sshll.u32 %s640_s17, 4  ;;  %s574_s18 = int_to_ptr.vmem [resolvable:$false] %s573_s18 }
  0x3b   : > { %s575_s19 = scalar_lea.vmem %s574_s18, 64  ;;  %p576_p7 = scmp.lt.s32.totalorder %s166_s6, %s574_s18 }
  0x3c   : > { %p571_p10 = pnand %p569_p5, %p525_p13  ;;  %p577_p6 = scmp.lt.s32.totalorder %s575_s19, %s568_s22 }
  0x3e   : > { %p572_p11 = pneg %p571_p10  ;;  %p578_p0 = por %p577_p6, %p576_p7 }
  0x40   : > { %p579_p12 = pnand %p578_p0, %p572_p11 }
  0x42   : > { %582 = shalt.err (!%p579_p12)
}
  0x43   : > { %463 = dma.hbm_to_vmem [thread:$0]  (!%p720_p9), %s767_s4, 32, %s166_s6, %s152_s27  }
  0x44   : > { %p850_p8 = scmp.ne.s32.totalorder %s849_s23, 0 }
  0x45   : > { %s176_s24 = sand.u32 (!%p850_p8), 1, %s621_s10   ;;  %p851_p13 = scmp.ne.s32.totalorder (!%p850_p8), %s845_s20, 0 }
  0x46   : > { %174 = sbr.rel (%p850_p8) target bundleno = 294 (0x126), region = 28  ;;  %s444_s25 = sshll.u32 (!%p850_p8), %s176_s24, 3 }
  0x47   : > { %s177_s26 = scalar_lea.sflag (!%p850_p8), [#allocation3], %s176_s24  ;;  %s180_s28 = scalar_lea.vmem (!%p850_p8), [#allocation2], %s444_s25 }
  0x4d   : > { %608 = dma.done.wait (%p851_p13), %s177_s26, 128  }
  0x4e   : > { %610 = vsyncadd (%p851_p13), %s177_s26, 4294967168  ;;  %s445_s5 = sshll.u32 %s176_s24, 1  ;;  %s186_s29 = scalar_lea.sflag [#allocation5], %s176_s24 }
  0x4f   : > { %s189_s30 = scalar_lea.vmem [#allocation4], %s445_s5 }
  0x50   : > { %612 = dma.done.wait (%p851_p13), %s186_s29, 32  }
  0x51   : > { %614 = vsyncadd (%p851_p13), %s186_s29, 4294967264  ;;  %p216_p7 = scmp.lt.s32.totalorder %s629_s12, 1  ;;  %v286_v0 = vlaneseq  ;;  %vm224_vm0 = vcmask 19456   ;;  %vm247_vm1 = vcmask 1043456   ;;  %v641_v4 = vmov 0.0   ;;  %v226_v5 = vld [vmem:[%s180_s28] sm:$0xff] }
  0x52   : > { %v227_v6 = vld [vmem:[%s189_s30] sm:$0x3]  ;;  %v243_v7 = vcombine.high %v226_v5, %v226_v5  ;;  %v248_v8 = vsel %vm247_vm1, %v226_v5, -inf  ;;  %vm324_vm4 = vcmask 7168   ;;  %vm326_vm5 = vcmask 15360  }
  0x53   : > { %s860_s12 = smov (!%p216_p7, %s629_s12), 1  ;;  %v287_v1 = vshrl.u32 %v286_v0, 7  ;;  %v249_v11 = vrot.slane %v248_v8, 4 }
  0x54   : > { %s446_s23 = sshll.u32 %s860_s12, 2  ;;  %v255_v12 = vsel %vm247_vm1, %v243_v7, -inf }
  0x55   : > { %v290_v2 = vsub.s32 0, %v287_v1  ;;  %v294_v3 = vsub.s32 1, %v287_v1  ;;  %s805_s27 = scalar_lea.vmem %s842_s2, %s446_s23  ;;  %v250_v13 = vmax.f32 %v248_v8, %v249_v11  ;;  %v256_v14 = vrot.slane %v255_v12, 4 }
  0x56   : > { %225 = vst.msk [vmem:[%s805_s27] sm:$0xf] %vm224_vm0, %v641_v4 }
  0x57   : > { %v291_v9 = vrot.slane %v227_v6, %v290_v2  ;;  %v295_v10 = vrot.slane %v227_v6, %v294_v3  ;;  %v251_v19 = vrot.slane %v250_v13, 2  ;;  %v257_v20 = vmax.f32 %v255_v12, %v256_v14 }
  0x59   : > { %vm296_vm2 = vcmp.eq.s32.totalorder %v291_v9, %v287_v1  ;;  %vm297_vm3 = vcmp.eq.s32.totalorder %v295_v10, %v287_v1  ;;  %v252_v22 = vmax.f32 %v250_v13, %v251_v19  ;;  %v258_v23 = vrot.slane %v257_v20, 2 }
  0x5a   : > { %v447_v15 = vsel %vm296_vm2, 1.0, %v641_v4  ;;  %v448_v16 = vsel %vm297_vm3, 1.0, %v641_v4 }
  0x5b   : > { %v318_v17 = vsel %vm247_vm1, %v447_v15, 0.0  ;;  %v319_v18 = vsel %vm247_vm1, %v448_v16, 0.0  ;;  %v253_v24 = vrot.slane %v252_v22, 1  ;;  %v259_v25 = vmax.f32 %v257_v20, %v258_v23 }
  0x5c   : > { %v320_v21 = vadd.f32 %v319_v18, %v318_v17 }
  0x5d   : > { %v254_v26 = vmax.f32 %v252_v22, %v253_v24  ;;  %v260_v27 = vrot.slane %v259_v25, 1  ;;  %v323_v0 = vld [vmem:[%s805_s27] sm:$0xf] }
  0x5e   : > { %321 = vadd.xlane.f32.xlu1 %v320_v21 }
  0x5f   : > { %v261_v28 = vmax.f32 %v259_v25, %v260_v27  ;;  %v262_v29 = vsub.f32 %v226_v5, %v254_v26 }
  0x61   : > { %v263_v30 = vsub.f32 %v243_v7, %v261_v28  ;;  %v264_v31 = vmul.f32 1.442695, %v262_v29 }
  0x63   : > { %515 = vpow2.f32 %v264_v31  ;;  %v266_v32 = vmul.f32 1.442695, %v263_v30 }
  0x65   : > { %517 = vpow2.f32 %v266_v32 }
  0x6d   : > { %v516_v33 = vpop.eup %515 }
  0x6e   : > { %v268_v34 = vsel %vm247_vm1, %v516_v33, 0.0 }
  0x6f   : > { %v518_v35 = vpop.eup %517  ;;  %v269_v36 = vrot.slane %v268_v34, 4 }
  0x70   : > { %v275_v37 = vsel %vm247_vm1, %v518_v35, 0.0 }
  0x71   : > { %v270_v38 = vadd.f32 %v269_v36, %v268_v34  ;;  %v276_v39 = vrot.slane %v275_v37, 4 }
  0x73   : > { %v271_v40 = vrot.slane %v270_v38, 2  ;;  %v277_v41 = vadd.f32 %v276_v39, %v275_v37 }
  0x75   : > { %v272_v42 = vadd.f32 %v271_v40, %v270_v38  ;;  %v278_v43 = vrot.slane %v277_v41, 2 }
  0x77   : > { %v273_v44 = vrot.slane %v272_v42, 1  ;;  %v279_v45 = vadd.f32 %v278_v43, %v277_v41 }
  0x79   : > { %v274_v46 = vadd.f32 %v273_v44, %v272_v42  ;;  %v280_v47 = vrot.slane %v279_v45, 1 }
  0x7b   : > { %v281_v48 = vadd.f32 %v280_v47, %v279_v45  ;;  %519 = vrcp.f32 %v274_v46 }
  0x7d   : > { %521 = vrcp.f32 %v281_v48 }
  0x85   : > { %v520_v49 = vpop.eup %519 }
  0x86   : > { %v284_v50 = vmul.f32 %v520_v49, %v516_v33 }
  0x87   : > { %v522_v51 = vpop.eup %521 }
  0x88   : > { %v285_v52 = vmul.f32 %v522_v51, %v518_v35  ;;  %v306_v53 = vmul.f32 %v447_v15, %v284_v50  ;;  %v313_v57 = vsel %vm247_vm1, %v284_v50, 0.0 }
  0x8a   : > { %v307_v54 = vmul.f32 %v448_v16, %v285_v52  ;;  %v308_v55 = vsel %vm247_vm1, %v306_v53, 0.0  ;;  %v314_v58 = vsel %vm247_vm1, %v285_v52, 0.0 }
  0x8b   : > { %v315_v60 = vadd.f32 %v314_v58, %v313_v57 }
  0x8c   : > { %v309_v56 = vsel %vm247_vm1, %v307_v54, 0.0 }
  0x8d   : > { %v310_v59 = vadd.f32 %v309_v56, %v308_v55 }
  0x8f   : > { %311 = vadd.xlane.f32.xlu0 %v310_v59 }
  0x93   : > { %316 = vadd.xlane.f32.xlu0 %v315_v60 }
  0xeb   : > { %v322_v62 = vpop.xlane.xlu1 %321 }
 0x11c   : > { %v312_v61 = vpop.xlane.xlu0 %311 }
 0x120   : > { %v317_v63 = vpop.xlane.xlu0 %316 }
 0x121   : > { %v325_v1 = vsel %vm324_vm4, %v312_v61, %v317_v63 }
 0x122   : > { %v327_v2 = vsel %vm326_vm5, %v325_v1, %v322_v62 }
 0x123   : > { %v328_v3 = vadd.f32 %v327_v2, %v323_v0 }
 0x125   : > { %330 = vst.msk [vmem:[%s805_s27] sm:$0xf] %vm224_vm0, %v328_v3 }
 0x126 PF: > { %s18_s14 = sadd.s32 1, %s637_s14   ;;  %s852_s9 = smov %s621_s10 }
 0x127   : > { %p15_p9 = scmp.ge.s32.totalorder %s18_s14, 4   ;;  %s853_s10 = smov %s625_s11 }
 0x128   : > { %s854_s11 = smov %s706_s21  ;;  %s855_s12 = smov %s633_s13 }
 0x129   : > { %s856_s13 = smov %s858_s16  ;;  %17 = sbr.rel (!%p15_p9) target bundleno = 6 (0x6), region = 85 }
 0x130   :  { %350 = vsyncpa [#allocation3], 1 }
 0x131   :  { %352 = vsyncpa [#allocation3 + $0x1], 1 }
 0x132   :  { %353 = vsyncpa [#allocation5], 1 }
 0x133   :  { %355 = vsyncpa [#allocation5 + $0x1], 1 }

</bundles_post_ra>
